<compile_context>
chip_gen: v5e
topology: v5e:2x2
jax: 0.10.0
libtpu: 0.0.40
codegen_flags: <defaults>
</compile_context>

<pallas_src>
import functools

import jax
import jax.numpy as jnp
from jax.experimental import pallas as pl
from jax.experimental.pallas import tpu as pltpu

D_PAD = 16       # 9/15-wide feature axes zero-padded to 16 sublanes
N_CLASSES = 2


def _round_up(x, m):
    return (x + m - 1) // m * m


def mlp_kernel(x_ref, wpack_ref, bpack_ref, w6_ref, b6_ref, o_ref):
    """One batch tile; batch is on the lane axis.

    x_ref     : [16, TILE_B]  bf16  (features on sublanes, batch on lanes)
    wpack_ref : [5, 16, 16]   bf16  fc1..fc5 weights [out, in], zero padded
    bpack_ref : [5, 16, 1]    f32   fc1..fc5 biases, zero padded
    w6_ref    : [2, 16]       bf16  fc6 weight
    b6_ref    : [2, 1]        f32   fc6 bias
    o_ref     : [2, TILE_B]   f32   softmax probabilities (lane-dense store)
    """
    h = x_ref[...]                                        # bf16 [16, T]

    # fc1..fc5 + ReLU.  dropout1 (p=0.1) after fc2 and fc4 is identity in
    # eval/inference mode, so no op is emitted for it.
    for l in range(5):                                    # static unroll
        acc = jnp.dot(wpack_ref[l], h, preferred_element_type=jnp.float32)
        acc = acc + bpack_ref[l]                          # [16,1] broadcast over lanes
        h = jnp.maximum(acc, 0.0).astype(jnp.bfloat16)

    # fc6 + softmax over the 2 real classes (sublane axis)
    logits = jnp.dot(w6_ref[...], h, preferred_element_type=jnp.float32) + b6_ref[...]
    m = jnp.max(logits, axis=0, keepdims=True)
    e = jnp.exp(logits - m)
    inv = pl.reciprocal(jnp.sum(e, axis=0, keepdims=True), approx=True)   # EUP slot
    o_ref[...] = (e * inv).astype(o_ref.dtype)


def _pack_params(params):
    """params: 6 (W[out,in], b[out]) pairs (torch layout) -> packed kernel operands."""
    wpack = jnp.zeros((5, D_PAD, D_PAD), jnp.float32)
    bpack = jnp.zeros((5, D_PAD, 1), jnp.float32)
    for l in range(5):
        w, b = params[l]
        wpack = wpack.at[l, : w.shape[0], : w.shape[1]].set(w)
        bpack = bpack.at[l, : b.shape[0], 0].set(b)
    w6, b6 = params[5]
    w6p = jnp.zeros((N_CLASSES, D_PAD), jnp.float32).at[:, : w6.shape[1]].set(w6)
    b6p = b6.reshape(N_CLASSES, 1).astype(jnp.float32)
    return wpack.astype(jnp.bfloat16), bpack, w6p.astype(jnp.bfloat16), b6p


@functools.partial(jax.jit, static_argnames=("tile_b",))
def mymodule10_forward(x, params, *, tile_b=2048):
    """x: [B, 9] float32.  params: 6 (W[out,in], b[out]) pairs (torch layout).

    Returns eval-mode softmax probabilities, [B, 2] float32.
    """
    B = x.shape[0]

    # Batch tile: multiple of 128 (lane width); >=512 is enough for the HBM
    # roofline, capped at 2048 so the per-tile VMEM footprint (a few hundred
    # KiB with double-buffering) stays far under v7x's 64 MiB.
    tile = min(int(tile_b), _round_up(B, 128))
    tile = max(128, _round_up(tile, 128))
    b_pad = _round_up(B, tile)

    # Batch-on-lanes layout: X^T, features zero-padded 9->16, batch padded to a
    # tile multiple, cast to bf16.  Zero pad is inert (padded weight cols are 0).
    xt = jnp.zeros((D_PAD, b_pad), jnp.bfloat16)
    xt = xt.at[: x.shape[1], :B].set(x.T.astype(jnp.bfloat16))

    wpack, bpack, w6p, b6p = _pack_params(params)

    grid = (b_pad // tile,)
    out_t = pl.pallas_call(
        mlp_kernel,
        out_shape=jax.ShapeDtypeStruct((N_CLASSES, b_pad), jnp.float32),
        grid_spec=pltpu.PrefetchScalarGridSpec(
            num_scalar_prefetch=0,
            grid=grid,
            in_specs=[
                pl.BlockSpec((D_PAD, tile), lambda i: (0, i)),          # X: streamed
                pl.BlockSpec((5, D_PAD, D_PAD), lambda i: (0, 0, 0)),   # resident
                pl.BlockSpec((5, D_PAD, 1), lambda i: (0, 0, 0)),       # resident
                pl.BlockSpec((N_CLASSES, D_PAD), lambda i: (0, 0)),     # resident
                pl.BlockSpec((N_CLASSES, 1), lambda i: (0, 0)),         # resident
            ],
            out_specs=pl.BlockSpec((N_CLASSES, tile), lambda i: (0, i)),
        ),
        compiler_params=pltpu.CompilerParams(
            dimension_semantics=("parallel",),  # shard batch tiles across v7x's 2 TCs
        ),
    )(xt, wpack, bpack, w6p, b6p)

    return out_t[:, :B].T  # [B, 2] float32


# ------------------------- test / reference harness -------------------------

def make_params(key, bias_const=0.01):
    """Xavier-uniform weights (torch layout [out, in]) + constant bias."""
    dims = [(9, 15), (15, 15), (15, 15), (15, 15), (15, 15), (15, 2)]
    params = []
    for i, (fan_in, fan_out) in enumerate(dims):
        k = jax.random.fold_in(key, i)
        limit = (6.0 / (fan_in + fan_out)) ** 0.5
        w = jax.random.uniform(k, (fan_out, fan_in), jnp.float32, -limit, limit)
        b = jnp.full((fan_out,), bias_const, jnp.float32)
        params.append((w, b))
    return params


def reference_forward_f32(x, params):
    h = x
    for w, b in params[:5]:
        h = jnp.maximum(h @ w.T + b, 0.0)
    w, b = params[5]
    return jax.nn.softmax(h @ w.T + b, axis=-1)


def reference_forward_bf16(x, params):
    # Mirrors the kernel numerics: bf16 operands, f32 accumulation/bias/softmax.
    h = x.astype(jnp.bfloat16)
    for w, b in params[:5]:
        acc = jnp.dot(h, w.T.astype(jnp.bfloat16), preferred_element_type=jnp.float32) + b
        h = jnp.maximum(acc, 0.0).astype(jnp.bfloat16)
    w, b = params[5]
    logits = jnp.dot(h, w.T.astype(jnp.bfloat16), preferred_element_type=jnp.float32) + b
    return jax.nn.softmax(logits, axis=-1)


if __name__ == "__main__":
    key = jax.random.PRNGKey(0)
    kx, kp = jax.random.split(key)

    B = 8
    x = jax.random.normal(kx, (B, 9), jnp.float32)
    params = make_params(kp, bias_const=0.01)

    out = jax.block_until_ready(mymodule10_forward(x, params))
    assert out.shape == (B, 2)

    ref_bf16 = reference_forward_bf16(x, params)
    ref_f32 = reference_forward_f32(x, params)
    assert jnp.allclose(out, ref_bf16, atol=5e-3, rtol=5e-3), (
        f"max err vs bf16-matched ref: {float(jnp.max(jnp.abs(out - ref_bf16)))}")
    assert jnp.allclose(out, ref_f32, atol=5e-2, rtol=5e-2), (
        f"max err vs f32 ref: {float(jnp.max(jnp.abs(out - ref_f32)))}")
    assert jnp.allclose(jnp.sum(out, axis=-1), 1.0, atol=1e-2)

    print("KERNEL_OK")
</pallas_src>

<mosaic_0001>
module attributes {stable_mosaic.version = 11 : i64} {
  func.func @mlp_kernel(%arg0: i32, %arg1: memref<16x128xbf16, #tpu.memory_space<vmem>>, %arg2: memref<5x16x16xbf16, #tpu.memory_space<vmem>>, %arg3: memref<5x16x1xf32, #tpu.memory_space<vmem>>, %arg4: memref<2x16xbf16, #tpu.memory_space<vmem>>, %arg5: memref<2x1xf32, #tpu.memory_space<vmem>>, %arg6: memref<2x128xf32, #tpu.memory_space<vmem>>) attributes {dimension_semantics = [#tpu.dimension_semantics<parallel>], iteration_bounds = array<i64: 1>, scalar_prefetch = 0 : i64, scratch_operands = 0 : i64, tpu.core_type = #tpu.core_type<tc>, window_params = [{transform_indices = @transform_0, window_bounds = array<i64: 16, 128>}, {pipeline_mode = #tpu.pipeline_mode<synchronous>, transform_indices = @transform_1, window_bounds = array<i64: 5, 16, 16>}, {pipeline_mode = #tpu.pipeline_mode<synchronous>, transform_indices = @transform_2, window_bounds = array<i64: 5, 16, 1>}, {pipeline_mode = #tpu.pipeline_mode<synchronous>, transform_indices = @transform_3, window_bounds = array<i64: 2, 16>}, {pipeline_mode = #tpu.pipeline_mode<synchronous>, transform_indices = @transform_4, window_bounds = array<i64: 2, 1>}, {transform_indices = @transform_5, window_bounds = array<i64: 2, 128>}]} {
    %c0 = arith.constant 0 : index
    %c0_0 = arith.constant 0 : index
    %0 = vector.load %arg1[%c0, %c0_0] : memref<16x128xbf16, #tpu.memory_space<vmem>>, vector<16x128xbf16>
    %c0_1 = arith.constant 0 : index
    %c0_2 = arith.constant 0 : index
    %c0_3 = arith.constant 0 : index
    %1 = vector.load %arg2[%c0_1, %c0_2, %c0_3] : memref<5x16x16xbf16, #tpu.memory_space<vmem>>, vector<1x16x16xbf16>
    %2 = vector.shape_cast %1 : vector<1x16x16xbf16> to vector<16x16xbf16>
    %cst = arith.constant dense<0.000000e+00> : vector<16x128xf32>
    %3 = tpu.matmul %2, %0, %cst {dimension_numbers = #tpu.dot_dimension_numbers<[1], [0], [0], [1], [0, 0, 1, 1], [], []>} : vector<16x16xbf16>, vector<16x128xbf16>, vector<16x128xf32> -> vector<16x128xf32>
    %c0_4 = arith.constant 0 : index
    %c0_5 = arith.constant 0 : index
    %c0_6 = arith.constant 0 : index
    %4 = vector.load %arg3[%c0_4, %c0_5, %c0_6] : memref<5x16x1xf32, #tpu.memory_space<vmem>>, vector<1x16x1xf32>
    %5 = vector.shape_cast %4 : vector<1x16x1xf32> to vector<16x1xf32>
    %6 = vector.broadcast %5 : vector<16x1xf32> to vector<16x128xf32>
    %7 = arith.addf %3, %6 : vector<16x128xf32>
    %cst_7 = arith.constant 0.000000e+00 : f32
    %8 = vector.broadcast %cst_7 : f32 to vector<16x128xf32>
    %9 = arith.maximumf %7, %8 : vector<16x128xf32>
    %10 = arith.truncf %9 : vector<16x128xf32> to vector<16x128xbf16>
    %c1 = arith.constant 1 : index
    %c0_8 = arith.constant 0 : index
    %c0_9 = arith.constant 0 : index
    %11 = vector.load %arg2[%c1, %c0_8, %c0_9] : memref<5x16x16xbf16, #tpu.memory_space<vmem>>, vector<1x16x16xbf16>
    %12 = vector.shape_cast %11 : vector<1x16x16xbf16> to vector<16x16xbf16>
    %cst_10 = arith.constant dense<0.000000e+00> : vector<16x128xf32>
    %13 = tpu.matmul %12, %10, %cst_10 {dimension_numbers = #tpu.dot_dimension_numbers<[1], [0], [0], [1], [0, 0, 1, 1], [], []>} : vector<16x16xbf16>, vector<16x128xbf16>, vector<16x128xf32> -> vector<16x128xf32>
    %c1_11 = arith.constant 1 : index
    %c0_12 = arith.constant 0 : index
    %c0_13 = arith.constant 0 : index
    %14 = vector.load %arg3[%c1_11, %c0_12, %c0_13] : memref<5x16x1xf32, #tpu.memory_space<vmem>>, vector<1x16x1xf32>
    %15 = vector.shape_cast %14 : vector<1x16x1xf32> to vector<16x1xf32>
    %16 = vector.broadcast %15 : vector<16x1xf32> to vector<16x128xf32>
    %17 = arith.addf %13, %16 : vector<16x128xf32>
    %cst_14 = arith.constant 0.000000e+00 : f32
    %18 = vector.broadcast %cst_14 : f32 to vector<16x128xf32>
    %19 = arith.maximumf %17, %18 : vector<16x128xf32>
    %20 = arith.truncf %19 : vector<16x128xf32> to vector<16x128xbf16>
    %c2 = arith.constant 2 : index
    %c0_15 = arith.constant 0 : index
    %c0_16 = arith.constant 0 : index
    %21 = vector.load %arg2[%c2, %c0_15, %c0_16] : memref<5x16x16xbf16, #tpu.memory_space<vmem>>, vector<1x16x16xbf16>
    %22 = vector.shape_cast %21 : vector<1x16x16xbf16> to vector<16x16xbf16>
    %cst_17 = arith.constant dense<0.000000e+00> : vector<16x128xf32>
    %23 = tpu.matmul %22, %20, %cst_17 {dimension_numbers = #tpu.dot_dimension_numbers<[1], [0], [0], [1], [0, 0, 1, 1], [], []>} : vector<16x16xbf16>, vector<16x128xbf16>, vector<16x128xf32> -> vector<16x128xf32>
    %c2_18 = arith.constant 2 : index
    %c0_19 = arith.constant 0 : index
    %c0_20 = arith.constant 0 : index
    %24 = vector.load %arg3[%c2_18, %c0_19, %c0_20] : memref<5x16x1xf32, #tpu.memory_space<vmem>>, vector<1x16x1xf32>
    %25 = vector.shape_cast %24 : vector<1x16x1xf32> to vector<16x1xf32>
    %26 = vector.broadcast %25 : vector<16x1xf32> to vector<16x128xf32>
    %27 = arith.addf %23, %26 : vector<16x128xf32>
    %cst_21 = arith.constant 0.000000e+00 : f32
    %28 = vector.broadcast %cst_21 : f32 to vector<16x128xf32>
    %29 = arith.maximumf %27, %28 : vector<16x128xf32>
    %30 = arith.truncf %29 : vector<16x128xf32> to vector<16x128xbf16>
    %c3 = arith.constant 3 : index
    %c0_22 = arith.constant 0 : index
    %c0_23 = arith.constant 0 : index
    %31 = vector.load %arg2[%c3, %c0_22, %c0_23] : memref<5x16x16xbf16, #tpu.memory_space<vmem>>, vector<1x16x16xbf16>
    %32 = vector.shape_cast %31 : vector<1x16x16xbf16> to vector<16x16xbf16>
    %cst_24 = arith.constant dense<0.000000e+00> : vector<16x128xf32>
    %33 = tpu.matmul %32, %30, %cst_24 {dimension_numbers = #tpu.dot_dimension_numbers<[1], [0], [0], [1], [0, 0, 1, 1], [], []>} : vector<16x16xbf16>, vector<16x128xbf16>, vector<16x128xf32> -> vector<16x128xf32>
    %c3_25 = arith.constant 3 : index
    %c0_26 = arith.constant 0 : index
    %c0_27 = arith.constant 0 : index
    %34 = vector.load %arg3[%c3_25, %c0_26, %c0_27] : memref<5x16x1xf32, #tpu.memory_space<vmem>>, vector<1x16x1xf32>
    %35 = vector.shape_cast %34 : vector<1x16x1xf32> to vector<16x1xf32>
    %36 = vector.broadcast %35 : vector<16x1xf32> to vector<16x128xf32>
    %37 = arith.addf %33, %36 : vector<16x128xf32>
    %cst_28 = arith.constant 0.000000e+00 : f32
    %38 = vector.broadcast %cst_28 : f32 to vector<16x128xf32>
    %39 = arith.maximumf %37, %38 : vector<16x128xf32>
    %40 = arith.truncf %39 : vector<16x128xf32> to vector<16x128xbf16>
    %c4 = arith.constant 4 : index
    %c0_29 = arith.constant 0 : index
    %c0_30 = arith.constant 0 : index
    %41 = vector.load %arg2[%c4, %c0_29, %c0_30] : memref<5x16x16xbf16, #tpu.memory_space<vmem>>, vector<1x16x16xbf16>
    %42 = vector.shape_cast %41 : vector<1x16x16xbf16> to vector<16x16xbf16>
    %cst_31 = arith.constant dense<0.000000e+00> : vector<16x128xf32>
    %43 = tpu.matmul %42, %40, %cst_31 {dimension_numbers = #tpu.dot_dimension_numbers<[1], [0], [0], [1], [0, 0, 1, 1], [], []>} : vector<16x16xbf16>, vector<16x128xbf16>, vector<16x128xf32> -> vector<16x128xf32>
    %c4_32 = arith.constant 4 : index
    %c0_33 = arith.constant 0 : index
    %c0_34 = arith.constant 0 : index
    %44 = vector.load %arg3[%c4_32, %c0_33, %c0_34] : memref<5x16x1xf32, #tpu.memory_space<vmem>>, vector<1x16x1xf32>
    %45 = vector.shape_cast %44 : vector<1x16x1xf32> to vector<16x1xf32>
    %46 = vector.broadcast %45 : vector<16x1xf32> to vector<16x128xf32>
    %47 = arith.addf %43, %46 : vector<16x128xf32>
    %cst_35 = arith.constant 0.000000e+00 : f32
    %48 = vector.broadcast %cst_35 : f32 to vector<16x128xf32>
    %49 = arith.maximumf %47, %48 : vector<16x128xf32>
    %50 = arith.truncf %49 : vector<16x128xf32> to vector<16x128xbf16>
    %c0_36 = arith.constant 0 : index
    %c0_37 = arith.constant 0 : index
    %51 = vector.load %arg4[%c0_36, %c0_37] : memref<2x16xbf16, #tpu.memory_space<vmem>>, vector<2x16xbf16>
    %cst_38 = arith.constant dense<0.000000e+00> : vector<2x128xf32>
    %52 = tpu.matmul %51, %50, %cst_38 {dimension_numbers = #tpu.dot_dimension_numbers<[1], [0], [0], [1], [0, 0, 1, 1], [], []>} : vector<2x16xbf16>, vector<16x128xbf16>, vector<2x128xf32> -> vector<2x128xf32>
    %c0_39 = arith.constant 0 : index
    %c0_40 = arith.constant 0 : index
    %53 = vector.load %arg5[%c0_39, %c0_40] : memref<2x1xf32, #tpu.memory_space<vmem>>, vector<2x1xf32>
    %54 = vector.broadcast %53 : vector<2x1xf32> to vector<2x128xf32>
    %55 = arith.addf %52, %54 : vector<2x128xf32>
    %cst_41 = arith.constant dense<0xFF800000> : vector<128xf32>
    %56 = vector.multi_reduction <maximumf>, %55, %cst_41 [0] : vector<2x128xf32> to vector<128xf32>
    %57 = vector.shape_cast %56 : vector<128xf32> to vector<1x128xf32>
    %58 = vector.broadcast %57 : vector<1x128xf32> to vector<2x128xf32>
    %59 = arith.subf %55, %58 : vector<2x128xf32>
    %60 = math.exp %59 : vector<2x128xf32>
    %cst_42 = arith.constant dense<0.000000e+00> : vector<128xf32>
    %61 = vector.multi_reduction <add>, %60, %cst_42 [0] : vector<2x128xf32> to vector<128xf32>
    %62 = vector.shape_cast %61 : vector<128xf32> to vector<1x128xf32>
    %63 = tpu.reciprocal %62 {approx = true} : vector<1x128xf32> -> vector<1x128xf32>
    %64 = vector.broadcast %63 : vector<1x128xf32> to vector<2x128xf32>
    %65 = arith.mulf %60, %64 : vector<2x128xf32>
    %c0_43 = arith.constant 0 : index
    %c0_44 = arith.constant 0 : index
    %66 = vector.load %arg6[%c0_43, %c0_44] : memref<2x128xf32, #tpu.memory_space<vmem>>, vector<2x128xf32>
    tpu.vector_store %arg6[%c0_43, %c0_44], %65 {strides = array<i32>} : memref<2x128xf32, #tpu.memory_space<vmem>>, vector<2x128xf32>,
    return
  }
  func.func @transform_0(%arg0: i32) -> (i32, i32) {
    %c0_i32 = arith.constant 0 : i32
    %c0_i32_0 = arith.constant 0 : i32
    return %c0_i32, %arg0 : i32, i32
  }
  func.func @transform_1(%arg0: i32) -> (i32, i32, i32) {
    %c0_i32 = arith.constant 0 : i32
    %c0_i32_0 = arith.constant 0 : i32
    %c0_i32_1 = arith.constant 0 : i32
    %c0_i32_2 = arith.constant 0 : i32
    return %c0_i32, %c0_i32_0, %c0_i32_1 : i32, i32, i32
  }
  func.func @transform_2(%arg0: i32) -> (i32, i32, i32) {
    %c0_i32 = arith.constant 0 : i32
    %c0_i32_0 = arith.constant 0 : i32
    %c0_i32_1 = arith.constant 0 : i32
    %c0_i32_2 = arith.constant 0 : i32
    return %c0_i32, %c0_i32_0, %c0_i32_1 : i32, i32, i32
  }
  func.func @transform_3(%arg0: i32) -> (i32, i32) {
    %c0_i32 = arith.constant 0 : i32
    %c0_i32_0 = arith.constant 0 : i32
    %c0_i32_1 = arith.constant 0 : i32
    return %c0_i32, %c0_i32_0 : i32, i32
  }
  func.func @transform_4(%arg0: i32) -> (i32, i32) {
    %c0_i32 = arith.constant 0 : i32
    %c0_i32_0 = arith.constant 0 : i32
    %c0_i32_1 = arith.constant 0 : i32
    return %c0_i32, %c0_i32_0 : i32, i32
  }
  func.func @transform_5(%arg0: i32) -> (i32, i32) {
    %c0_i32 = arith.constant 0 : i32
    %c0_i32_0 = arith.constant 0 : i32
    return %c0_i32, %arg0 : i32, i32
  }
}

</mosaic_0001>

<bundles_post_ra>
// kernel: mymodule10_forward.1
= control target key start
LH: loop header
LB: loop body
LE: loop exit
PB: predicated region body
PF: predicated region fallthrough
CT: control target
= control target key end

     0   :  { %v341_v0 = vmov 0   ;;  %vm48_vm0 = vcmask 130048   ;;  %vm256_vm1 = vcmask 1041408   ;;  %s435_s2 = inlined_call_operand.vmem [shape: f32[5,16,1], index: 2, kind: input, shape index: {}]   ;;  %s436_s0 = inlined_call_operand.vmem [shape: bf16[16,128], index: 0, kind: input, shape index: {}]   ;;  %s437_s1 = inlined_call_operand.vmem [shape: bf16[5,16,16], index: 1, kind: input, shape index: {}]   ;;  %s438_s4 = inlined_call_operand.vmem [shape: f32[2,1], index: 4, kind: input, shape index: {}]   ;;  %s439_s3 = inlined_call_operand.vmem [shape: bf16[2,16], index: 3, kind: input, shape index: {}]   ;;  %s440_s5 = inlined_call_operand.vmem [shape: f32[2,128], index: 5, kind: output, shape index: {}]  }
   0x1   :  { %334 = vset.pattern.permute.xlu0 %v341_v0  ;;  %v25_v1 = vld [vmem:[%s435_s2] sm:$0xff]  ;;  %335 = vset.pattern.permute.xlu1 %v341_v0  ;;  %v26_v4 = vld [vmem:[%s435_s2 + $0x8] sm:$0xff]  ;;  %v310_v5 = vld [vmem:[%s435_s2 + $0x30] sm:$0xff] }
   0x2   :  { %v327_v2 = vld [vmem:[%s436_s0] sm:$0xff]  ;;  %29 = vperm.xlu0 %334, %v25_v1   ;;  %336 = vset.pattern.permute.xlu2 %v341_v0  ;;  %v320_v6 = vld [vmem:[%s435_s2 + $0x48] sm:$0xff]  ;;  %v292_v7 = vld [vmem:[%s435_s2 + $0x10] sm:$0xff] }
   0x3   :  { %v328_v3 = vld [vmem:[%s437_s1] sm:$0xff]  ;;  %59 = vmatpush.bf16.msra.mxu0 %v327_v2  ;;  %77 = vperm.xlu1 %335, %v292_v7   ;;  %v293_v8 = vld [vmem:[%s435_s2 + $0x18] sm:$0xff]  ;;  %v329_v20 = vld [vmem:[%s437_s1 + $0x8] sm:$0xff] }
   0x4   :  { %v311_v9 = vld [vmem:[%s435_s2 + $0x38] sm:$0xff]  ;;  %v234_v10 = vld [vmem:[%s438_s4] sm:$0x3]  ;;  %v302_v22 = vld [vmem:[%s435_s2 + $0x28] sm:$0xff] }
   0x5   :  { %v301_v21 = vld [vmem:[%s435_s2 + $0x20] sm:$0xff]  ;;  %v330_v33 = vld [vmem:[%s437_s1 + $0x10] sm:$0xff]  ;;  %v331_v43 = vld [vmem:[%s437_s1 + $0x18] sm:$0xff] }
   0x6   :  { %289 = vmatmul.msk.bf16.vlgmr.msra.gmra.mxu0 %vm48_vm0, %v328_v3  ;;  %118 = vperm.xlu2 %336, %v301_v21   ;;  %v319_v25 = vld [vmem:[%s435_s2 + $0x40] sm:$0xff] }
   0x7   :  { %v332_v53 = vld [vmem:[%s437_s1 + $0x20] sm:$0xff] }
   0x8   :  { %v233_v63 = vld [vmem:[%s439_s3] sm:$0x1] }
   0xa   :  { %34 = vperm.xlu0 %334, %v26_v4  }
   0xb   :  { %82 = vperm.xlu1 %335, %v293_v8  }
   0xe   :  { %123 = vperm.xlu2 %336, %v302_v22  }
  0x12   :  { %159 = vperm.xlu0 %334, %v310_v5  }
  0x13   :  { %164 = vperm.xlu1 %335, %v311_v9  }
  0x16   :  { %200 = vperm.xlu2 %336, %v319_v25  }
  0x1a   :  { %205 = vperm.xlu0 %334, %v320_v6  }
  0x1b   :  { %237 = vperm.xlu1 %335, %v234_v10  }
  0x60   :  { %v119_v34 = vpop.permute.xlu2 %118 }
  0x68   :  { %v124_v37 = vpop.permute.xlu2 %123 }
  0x70   :  { %v201_v55 = vpop.permute.xlu2 %200 }
  0x74   :  { %v30_v11 = vpop.permute.xlu0 %29 }
  0x75   :  { %v78_v23 = vpop.permute.xlu1 %77 }
  0x7c   :  { %v35_v14 = vpop.permute.xlu0 %34 }
  0x7d   :  { %v83_v27 = vpop.permute.xlu1 %82 }
  0x83   :  { %v61_v12 = vpop.f32.mrf.mxu0 }
  0x84   :  { %v62_v13 = vadd.f32 %v61_v12, %v30_v11  ;;  %v160_v45 = vpop.permute.xlu0 %159 }
  0x85   :  { %v165_v47 = vpop.permute.xlu1 %164 }
  0x86   :  { %v66_v17 = vmax.f32 %v62_v13, 0.0 }
  0x8b   :  { %v63_v15 = vpop.f32.mrf.mxu0 }
  0x8c   :  { %v64_v16 = vadd.f32 %v63_v15, %v35_v14  ;;  %v206_v57 = vpop.permute.xlu0 %205 }
  0x8d   :  { %v238_v0 = vpop.permute.xlu1 %237 }
  0x8e   :  { %v67_v18 = vmax.f32 %v64_v16, 0.0 }
  0x90   :  { %v68_v19 = vpack.c.bf16 %v67_v18, %v66_v17 }
  0x92   :  { %100 = vmatpush.bf16.msra.mxu1 %v68_v19 }
  0x95   :  { %298 = vmatmul.msk.bf16.vlgmr.msra.gmra.mxu1 %vm48_vm0, %v329_v20 }
 0x112   :  { %v102_v24 = vpop.f32.mrf.mxu1 }
 0x113   :  { %v103_v26 = vadd.f32 %v102_v24, %v78_v23 }
 0x115   :  { %v107_v30 = vmax.f32 %v103_v26, 0.0 }
 0x11a   :  { %v104_v28 = vpop.f32.mrf.mxu1 }
 0x11b   :  { %v105_v29 = vadd.f32 %v104_v28, %v83_v27 }
 0x11d   :  { %v108_v31 = vmax.f32 %v105_v29, 0.0 }
 0x11f   :  { %v109_v32 = vpack.c.bf16 %v108_v31, %v107_v30 }
 0x121   :  { %141 = vmatpush.bf16.msra.mxu2 %v109_v32 }
 0x124   :  { %307 = vmatmul.msk.bf16.vlgmr.msra.gmra.mxu2 %vm48_vm0, %v330_v33 }
 0x1a7   :  { %v143_v35 = vpop.f32.mrf.mxu2 }
 0x1a8   :  { %v144_v36 = vadd.f32 %v143_v35, %v119_v34 }
 0x1aa   :  { %v148_v40 = vmax.f32 %v144_v36, 0.0 }
 0x1af   :  { %v145_v38 = vpop.f32.mrf.mxu2 }
 0x1b0   :  { %v146_v39 = vadd.f32 %v145_v38, %v124_v37 }
 0x1b2   :  { %v149_v41 = vmax.f32 %v146_v39, 0.0 }
 0x1b4   :  { %v150_v42 = vpack.c.bf16 %v149_v41, %v148_v40 }
 0x1b6   :  { %182 = vmatpush.bf16.msra.mxu3 %v150_v42 }
 0x1b9   :  { %316 = vmatmul.msk.bf16.vlgmr.msra.gmra.mxu3 %vm48_vm0, %v331_v43 }
 0x23c   :  { %v184_v44 = vpop.f32.mrf.mxu3 }
 0x23d   :  { %v185_v46 = vadd.f32 %v184_v44, %v160_v45 }
 0x23f   :  { %v189_v50 = vmax.f32 %v185_v46, 0.0 }
 0x244   :  { %v186_v48 = vpop.f32.mrf.mxu3 }
 0x245   :  { %v187_v49 = vadd.f32 %v186_v48, %v165_v47 }
 0x247   :  { %v190_v51 = vmax.f32 %v187_v49, 0.0 }
 0x249   :  { %v191_v52 = vpack.c.bf16 %v190_v51, %v189_v50 }
 0x24b   :  { %223 = vmatpush.bf16.msrb.mxu0 %v191_v52 }
 0x24e   :  { %325 = vmatmul.msk.bf16.vlgmr.msrb.gmra.mxu0 %vm48_vm0, %v332_v53 }
 0x2cb   :  { %v225_v54 = vpop.f32.mrf.mxu0 }
 0x2cc   :  { %v226_v56 = vadd.f32 %v225_v54, %v201_v55 }
 0x2ce   :  { %v230_v60 = vmax.f32 %v226_v56, 0.0 }
 0x2d3   :  { %v227_v58 = vpop.f32.mrf.mxu0 }
 0x2d4   :  { %v228_v59 = vadd.f32 %v227_v58, %v206_v57 }
 0x2d6   :  { %v231_v61 = vmax.f32 %v228_v59, 0.0 }
 0x2d8   :  { %v232_v62 = vpack.c.bf16 %v231_v61, %v230_v60 }
 0x2da   :  { %250 = vmatpush.bf16.msrb.mxu1 %v232_v62 }
 0x2dd   :  { %326 = vmatmul.msk.bf16.vlgmr.msrb.gmra.mxu1 %vm48_vm0, %v233_v63 }
 0x35a   :  { %v252_v1 = vpop.f32.mrf.mxu1 }
 0x35b   :  { %v253_v2 = vadd.f32 %v252_v1, %v238_v0 }
 0x35d   :  { %v257_v3 = vsel %vm256_vm1, %v253_v2, -inf }
 0x35e   :  { %v258_v4 = vrot.slane %v257_v3, 4 }
 0x360   :  { %v259_v5 = vmax.f32 %v257_v3, %v258_v4 }
 0x362   :  { %v260_v6 = vrot.slane %v259_v5, 2  ;;  %v254_v7 = vpop.f32.mrf.mxu1 }
 0x364   :  { %v261_v8 = vmax.f32 %v259_v5, %v260_v6 }
 0x366   :  { %v262_v9 = vrot.slane %v261_v8, 1 }
 0x368   :  { %v263_v10 = vmax.f32 %v261_v8, %v262_v9 }
 0x36a   :  { %v264_v11 = vsub.f32 %v253_v2, %v263_v10 }
 0x36c   :  { %v265_v12 = vmul.f32 1.442695, %v264_v11 }
 0x36e   :  { %337 = vpow2.f32 %v265_v12 }
 0x374   :  { %v338_v13 = vpop.eup %337 }
 0x375   :  { %v267_v14 = vsel %vm256_vm1, %v338_v13, 0.0 }
 0x376   :  { %v268_v15 = vrot.slane %v267_v14, 4 }
 0x378   :  { %v269_v16 = vadd.f32 %v268_v15, %v267_v14 }
 0x37a   :  { %v270_v17 = vrot.slane %v269_v16, 2 }
 0x37c   :  { %v271_v18 = vadd.f32 %v270_v17, %v269_v16 }
 0x37e   :  { %v272_v19 = vrot.slane %v271_v18, 1 }
 0x380   :  { %v273_v20 = vadd.f32 %v272_v19, %v271_v18 }
 0x382   :  { %339 = vrcp.f32 %v273_v20 }
 0x388   :  { %v340_v21 = vpop.eup %339 }
 0x389   :  { %v275_v22 = vmul.f32 %v340_v21, %v338_v13 }
 0x38b   :  { %276 = vst [vmem:[%s440_s5] sm:$0x3] %v275_v22 }

</bundles_post_ra>
